<compile_context>
chip_gen: v6e
topology: v6e:2x2x1
jax: 0.10.0
libtpu: 0.0.40
codegen_flags: <defaults>
</compile_context>

<pallas_src>
import functools

import jax
import jax.numpy as jnp
from jax.experimental import pallas as pl
from jax.experimental.pallas import tpu as pltpu

F32 = jnp.float32
BF16 = jnp.bfloat16

_VMEM_LIMIT = None


def _vmem_limit():
    global _VMEM_LIMIT
    if _VMEM_LIMIT is None:
        try:
            cap = int(getattr(pltpu.get_tpu_info(), "vmem_capacity_bytes",
                              64 * 1024 * 1024))
        except Exception:  # pragma: no cover - conservative fallback
            cap = 64 * 1024 * 1024
        _VMEM_LIMIT = min(int(cap * 3 // 4), 100 * 1024 * 1024)
    return _VMEM_LIMIT


def _cp(sem):
    return pltpu.CompilerParams(dimension_semantics=sem,
                                vmem_limit_bytes=_vmem_limit())


def _round_up(x, m):
    return ((x + m - 1) // m) * m


def _choose_tn(n):
    # lane-dense tiles when divisible, otherwise a full-dim block (no padding).
    if n % 128 == 0:
        for t in (512, 256, 128):
            if n % t == 0:
                return t
    return n


def _choose_tk(k):
    if k % 128 == 0:
        for t in (1024, 512, 256, 128):
            if k % t == 0:
                return t
    return k  # full-dim K block: single K step, no padding


def _choose_tm(m, cap=512):
    if m <= cap:
        return m, m                     # full-dim block, always legal
    t0 = cap - (cap % 8)
    for t in range(t0, 7, -8):
        if m % t == 0:
            return t, m
    return t0, _round_up(m, t0)


def _apply_act(x, act):
    if act == "relu":
        return jnp.maximum(x, 0.0)
    if act == "sigmoid":
        return jax.nn.sigmoid(x)
    if act == "gelu":
        return jax.nn.gelu(x, approximate=True)
    return x


# ---------------------------------------------------------------------------
# Tiled matmul with fused per-channel affine (folded BN / bias) + activation
# ---------------------------------------------------------------------------
def _mm_k_kernel(a_ref, w_ref, s_ref, t_ref, o_ref, acc_ref, *, act):
    @pl.when(pl.program_id(2) == 0)
    def _():
        acc_ref[...] = jnp.zeros_like(acc_ref)

    acc_ref[...] += jnp.dot(a_ref[...], w_ref[...],
                            preferred_element_type=jnp.float32)

    @pl.when(pl.program_id(2) == pl.num_programs(2) - 1)
    def _():
        out = acc_ref[...] * s_ref[...] + t_ref[...]
        o_ref[...] = _apply_act(out, act).astype(o_ref.dtype)


def _mm1_kernel(a_ref, w_ref, s_ref, t_ref, o_ref, *, act):
    out = jnp.dot(a_ref[...], w_ref[...], preferred_element_type=jnp.float32)
    out = out * s_ref[...] + t_ref[...]
    o_ref[...] = _apply_act(out, act).astype(o_ref.dtype)


def mm_affine_act(a, w, scale, shift, act="none", out_dtype=BF16):
    M, K = a.shape
    N = w.shape[1]
    tm, Mp = _choose_tm(M, cap=512)
    tn = _choose_tn(N)
    tk = _choose_tk(K)

    a_p = a.astype(BF16)
    if Mp != M:
        a_p = jnp.pad(a_p, ((0, Mp - M), (0, 0)))
    w_p = w.astype(BF16)
    s_p = scale.astype(F32).reshape(1, N)
    t_p = shift.astype(F32).reshape(1, N)

    kt = K // tk
    if kt == 1:
        out = pl.pallas_call(
            functools.partial(_mm1_kernel, act=act),
            out_shape=jax.ShapeDtypeStruct((Mp, N), out_dtype),
            grid=(Mp // tm, N // tn),
            in_specs=[
                pl.BlockSpec((tm, K), lambda i, j: (i, 0)),
                pl.BlockSpec((K, tn), lambda i, j: (0, j)),
                pl.BlockSpec((1, tn), lambda i, j: (0, j)),
                pl.BlockSpec((1, tn), lambda i, j: (0, j)),
            ],
            out_specs=pl.BlockSpec((tm, tn), lambda i, j: (i, j)),
            compiler_params=_cp(("parallel", "parallel")),
        )(a_p, w_p, s_p, t_p)
    else:
        out = pl.pallas_call(
            functools.partial(_mm_k_kernel, act=act),
            out_shape=jax.ShapeDtypeStruct((Mp, N), out_dtype),
            grid=(Mp // tm, N // tn, kt),
            in_specs=[
                pl.BlockSpec((tm, tk), lambda i, j, k: (i, k)),
                pl.BlockSpec((tk, tn), lambda i, j, k: (k, j)),
                pl.BlockSpec((1, tn), lambda i, j, k: (0, j)),
                pl.BlockSpec((1, tn), lambda i, j, k: (0, j)),
            ],
            out_specs=pl.BlockSpec((tm, tn), lambda i, j, k: (i, j)),
            scratch_shapes=[pltpu.VMEM((tm, tn), jnp.float32)],
            compiler_params=_cp(("parallel", "parallel", "arbitrary")),
        )(a_p, w_p, s_p, t_p)
    return out[:M] if Mp != M else out


# ---------------------------------------------------------------------------
# 3x3 conv (NHWC), multi-input (K-split over concat parts), fused affine+act.
# In-kernel im2col: 3 dy row slabs (layout-preserving reshape, W padded to a
# multiple of 8), 9 MXU dots per part, 3 output-sized dx slices.
# ---------------------------------------------------------------------------
def _conv3_kernel(*refs, offs, H, W, Wp, act):
    nparts = len(offs)
    x_refs = refs[:nparts]
    w_ref, s_ref, t_ref, o_ref = refs[nparts:nparts + 4]
    tn = o_ref.shape[-1]
    rows = H * Wp
    accs = [jnp.zeros((rows, tn), jnp.float32) for _ in range(3)]
    for p in range(nparts):
        cin = x_refs[p].shape[-1]
        off = offs[p]
        for dy in range(3):
            slab = x_refs[p][0, dy:dy + H, :, :].reshape(rows, cin)
            for dx in range(3):
                accs[dx] = accs[dx] + jnp.dot(
                    slab, w_ref[dy * 3 + dx, off:off + cin, :],
                    preferred_element_type=jnp.float32)
    out = (accs[0].reshape(H, Wp, tn)[:, 0:W, :]
           + accs[1].reshape(H, Wp, tn)[:, 1:W + 1, :]
           + accs[2].reshape(H, Wp, tn)[:, 2:W + 2, :])
    out = out * s_ref[...] + t_ref[...]
    o_ref[0] = _apply_act(out, act).astype(o_ref.dtype)


def conv3x3(parts, w9, scale, shift, act="none", out_dtype=BF16):
    if not isinstance(parts, (list, tuple)):
        parts = [parts]
    B, H, W, _ = parts[0].shape
    N = w9.shape[-1]
    tn = _choose_tn(N)
    Wp = _round_up(W + 2, 8)

    xps, offs = [], []
    off = 0
    for xpart in parts:
        cin = xpart.shape[-1]
        offs.append(off)
        off += cin
        xps.append(jnp.pad(xpart.astype(BF16),
                           ((0, 0), (1, 1), (1, Wp - (W + 1)), (0, 0))))
    ctot = off
    w_p = w9.astype(BF16)
    s_p = scale.astype(F32).reshape(1, N)
    t_p = shift.astype(F32).reshape(1, N)

    in_specs = ([pl.BlockSpec((1, H + 2, Wp, xp.shape[-1]),
                              lambda b, j: (b, 0, 0, 0)) for xp in xps]
                + [pl.BlockSpec((9, ctot, tn), lambda b, j: (0, 0, j)),
                   pl.BlockSpec((1, tn), lambda b, j: (0, j)),
                   pl.BlockSpec((1, tn), lambda b, j: (0, j))])
    out = pl.pallas_call(
        functools.partial(_conv3_kernel, offs=tuple(offs), H=H, W=W, Wp=Wp,
                          act=act),
        out_shape=jax.ShapeDtypeStruct((B, H, W, N), out_dtype),
        grid=(B, N // tn),
        in_specs=in_specs,
        out_specs=pl.BlockSpec((1, H, W, tn), lambda b, j: (b, 0, 0, j)),
        compiler_params=_cp(("parallel", "parallel")),
    )(*xps, w_p, s_p, t_p)
    return out


# ---------------------------------------------------------------------------
# Depthwise 3x3 conv (NHWC), fused bias + activation
# ---------------------------------------------------------------------------
def _dw_kernel(x_ref, w_ref, b_ref, o_ref, *, H, W, act):
    tc = o_ref.shape[-1]
    x = x_ref[0].astype(jnp.float32)          # cast hoisted out of tap loop
    w = w_ref[...]                              # (9, tc) f32
    acc = jnp.zeros((H, W, tc), jnp.float32)
    for t in range(9):
        dy, dx = t // 3, t % 3
        acc = acc + x[dy:dy + H, dx:dx + W, :] * w[t][None, None, :]
    acc = acc + b_ref[...]
    o_ref[0] = _apply_act(acc, act).astype(o_ref.dtype)


def dwconv3x3(x_nhwc, w9c, bias, act="none", out_dtype=BF16):
    B, H, W, C = x_nhwc.shape
    tc = 256 if C % 256 == 0 else C
    xp = jnp.pad(x_nhwc.astype(BF16), ((0, 0), (1, 1), (1, 1), (0, 0)))
    return pl.pallas_call(
        functools.partial(_dw_kernel, H=H, W=W, act=act),
        out_shape=jax.ShapeDtypeStruct((B, H, W, C), out_dtype),
        grid=(B, C // tc),
        in_specs=[
            pl.BlockSpec((1, H + 2, W + 2, tc), lambda b, c: (b, 0, 0, c)),
            pl.BlockSpec((9, tc), lambda b, c: (0, c)),
            pl.BlockSpec((1, tc), lambda b, c: (0, c)),
        ],
        out_specs=pl.BlockSpec((1, H, W, tc), lambda b, c: (b, 0, 0, c)),
        compiler_params=_cp(("parallel", "parallel")),
    )(xp, w9c.astype(F32), bias.reshape(1, C).astype(F32))


# ---------------------------------------------------------------------------
# LayerNorm (optionally fused residual add), row-tiled
# ---------------------------------------------------------------------------
def _ln_kernel(x_ref, g_ref, b_ref, o_ref, *, eps):
    x = x_ref[...].astype(jnp.float32)
    mu = jnp.mean(x, axis=-1, keepdims=True)
    var = jnp.mean(jnp.square(x - mu), axis=-1, keepdims=True)
    o_ref[...] = ((x - mu) * jax.lax.rsqrt(var + eps) * g_ref[...]
                  + b_ref[...]).astype(o_ref.dtype)


def _ln_res_kernel(x_ref, r_ref, g_ref, b_ref, o_ref, *, eps):
    x = x_ref[...].astype(jnp.float32) + r_ref[...].astype(jnp.float32)
    mu = jnp.mean(x, axis=-1, keepdims=True)
    var = jnp.mean(jnp.square(x - mu), axis=-1, keepdims=True)
    o_ref[...] = ((x - mu) * jax.lax.rsqrt(var + eps) * g_ref[...]
                  + b_ref[...]).astype(o_ref.dtype)


def layernorm(x2d, g, b, res=None, eps=1e-5):
    M, C = x2d.shape
    tm, Mp = _choose_tm(M, cap=1024)

    def padm(a):
        return jnp.pad(a, ((0, Mp - M), (0, 0))) if Mp != M else a

    g2 = g.reshape(1, C).astype(F32)
    b2 = b.reshape(1, C).astype(F32)
    row_spec = pl.BlockSpec((tm, C), lambda i: (i, 0))
    vec_spec = pl.BlockSpec((1, C), lambda i: (0, 0))
    if res is None:
        kern = functools.partial(_ln_kernel, eps=eps)
        in_specs = [row_spec, vec_spec, vec_spec]
        args = (padm(x2d), g2, b2)
    else:
        kern = functools.partial(_ln_res_kernel, eps=eps)
        in_specs = [row_spec, row_spec, vec_spec, vec_spec]
        args = (padm(x2d), padm(res), g2, b2)
    out = pl.pallas_call(
        kern,
        out_shape=jax.ShapeDtypeStruct((Mp, C), BF16),
        grid=(Mp // tm,),
        in_specs=in_specs,
        out_specs=row_spec,
        compiler_params=_cp(("parallel",)),
    )(*args)
    return out[:M] if Mp != M else out


# ---------------------------------------------------------------------------
# Attention: single-KV-tile softmax kernel (short KV after token reduction)
# plus flash-style online-softmax fallback for long KV.
# ---------------------------------------------------------------------------
def _attn_single_kernel(mask_ref, q_ref, k_ref, v_ref, o_ref, *, scale):
    s = jnp.einsum("bqd,bkd->bqk", q_ref[...], k_ref[...],
                   preferred_element_type=jnp.float32) * scale
    s = s + mask_ref[...]
    m = jnp.max(s, axis=-1, keepdims=True)
    p = jnp.exp(s - m)
    l = jnp.sum(p, axis=-1, keepdims=True)
    o = jnp.einsum("bqk,bkd->bqd", p.astype(v_ref.dtype), v_ref[...],
                   preferred_element_type=jnp.float32)
    o_ref[...] = (o * pl.reciprocal(l, approx=True)).astype(o_ref.dtype)


def _flash_kernel(mask_ref, q_ref, k_ref, v_ref, o_ref,
                  m_sc, l_sc, acc_sc, *, scale):
    @pl.when(pl.program_id(1) == 0)
    def _():
        m_sc[...] = jnp.full_like(m_sc, -1e30)
        l_sc[...] = jnp.zeros_like(l_sc)
        acc_sc[...] = jnp.zeros_like(acc_sc)

    s = jnp.einsum("bqd,bkd->bqk", q_ref[...], k_ref[...],
                   preferred_element_type=jnp.float32) * scale
    s = s + mask_ref[...]
    m_new = jnp.maximum(m_sc[...], jnp.max(s, axis=-1, keepdims=True))
    alpha = jnp.exp(m_sc[...] - m_new)
    p = jnp.exp(s - m_new)
    l_sc[...] = alpha * l_sc[...] + jnp.sum(p, axis=-1, keepdims=True)
    acc_sc[...] = alpha * acc_sc[...] + jnp.einsum(
        "bqk,bkd->bqd", p.astype(v_ref.dtype), v_ref[...],
        preferred_element_type=jnp.float32)
    m_sc[...] = m_new

    @pl.when(pl.program_id(1) == pl.num_programs(1) - 1)
    def _():
        o_ref[...] = (acc_sc[...]
                      * pl.reciprocal(l_sc[...], approx=True)).astype(o_ref.dtype)


def attention(q, k, v, scale):
    B, Nq, D = q.shape
    Nk = k.shape[1]
    single = _round_up(Nk, 128) <= 2048
    Nkp = _round_up(Nk, 128 if single else 512)
    tq, Nqp = _choose_tm(Nq, cap=512)

    qb = q.astype(BF16)
    if Nqp != Nq:
        qb = jnp.pad(qb, ((0, 0), (0, Nqp - Nq), (0, 0)))
    kb, vb = k.astype(BF16), v.astype(BF16)
    if Nkp != Nk:
        kb = jnp.pad(kb, ((0, 0), (0, Nkp - Nk), (0, 0)))
        vb = jnp.pad(vb, ((0, 0), (0, Nkp - Nk), (0, 0)))
    mask = jnp.where(jnp.arange(Nkp) < Nk, 0.0, -1e30).astype(F32).reshape(1, Nkp)

    if single:
        out = pl.pallas_call(
            functools.partial(_attn_single_kernel, scale=scale),
            out_shape=jax.ShapeDtypeStruct((B, Nqp, D), BF16),
            grid=(B, Nqp // tq),
            in_specs=[
                pl.BlockSpec((1, Nkp), lambda b, qi: (0, 0)),
                pl.BlockSpec((1, tq, D), lambda b, qi: (b, qi, 0)),
                pl.BlockSpec((1, Nkp, D), lambda b, qi: (b, 0, 0)),
                pl.BlockSpec((1, Nkp, D), lambda b, qi: (b, 0, 0)),
            ],
            out_specs=pl.BlockSpec((1, tq, D), lambda b, qi: (b, qi, 0)),
            compiler_params=_cp(("parallel", "parallel")),
        )(mask, qb, kb, vb)
    else:
        tk = 512
        out = pl.pallas_call(
            functools.partial(_flash_kernel, scale=scale),
            out_shape=jax.ShapeDtypeStruct((B, Nqp, D), BF16),
            grid=(Nqp // tq, Nkp // tk),
            in_specs=[
                pl.BlockSpec((1, tk), lambda qi, ki: (0, ki)),
                pl.BlockSpec((B, tq, D), lambda qi, ki: (0, qi, 0)),
                pl.BlockSpec((B, tk, D), lambda qi, ki: (0, ki, 0)),
                pl.BlockSpec((B, tk, D), lambda qi, ki: (0, ki, 0)),
            ],
            out_specs=pl.BlockSpec((B, tq, D), lambda qi, ki: (0, qi, 0)),
            scratch_shapes=[pltpu.VMEM((B, tq, 1), jnp.float32),
                            pltpu.VMEM((B, tq, 1), jnp.float32),
                            pltpu.VMEM((B, tq, D), jnp.float32)],
            compiler_params=_cp(("parallel", "arbitrary")),
        )(mask, qb, kb, vb)
    return out[:, :Nq] if Nqp != Nq else out


# ---------------------------------------------------------------------------
# ACFM fused kernels: masks+masked-sum+pooling, and the MSCA gate tail.
# ---------------------------------------------------------------------------
def _acfm_mix_kernel(xcm_ref, ycm_ref, z_ref, pool_ref, gap_ref, gmp_ref, *, C):
    xcm = xcm_ref[0].astype(jnp.float32)          # (H, W, C+1): [conv | mask]
    ycm = ycm_ref[0].astype(jnp.float32)
    xc = xcm[:, :, :C]
    yc = ycm[:, :, :C]
    mx = jax.nn.sigmoid(xcm[:, :, C:])
    my = jax.nn.sigmoid(ycm[:, :, C:])
    z = xc * mx + yc * my
    z_ref[0] = z.astype(z_ref.dtype)
    pool_ref[0, 0] = jnp.mean(z, axis=-1)          # channel-avg pool
    pool_ref[0, 1] = jnp.max(z, axis=-1)           # channel-max pool
    gap_ref[...] = jnp.mean(z, axis=(0, 1)).reshape(1, 1, C)
    gmp_ref[...] = jnp.max(z, axis=(0, 1)).reshape(1, 1, C)


def acfm_mix(xcm, ycm, C):
    B, H, W, _ = xcm.shape
    return pl.pallas_call(
        functools.partial(_acfm_mix_kernel, C=C),
        out_shape=(jax.ShapeDtypeStruct((B, H, W, C), BF16),
                   jax.ShapeDtypeStruct((B, 2, H, W), F32),
                   jax.ShapeDtypeStruct((B, 1, C), F32),
                   jax.ShapeDtypeStruct((B, 1, C), F32)),
        grid=(B,),
        in_specs=[pl.BlockSpec((1, H, W, C + 1), lambda b: (b, 0, 0, 0)),
                  pl.BlockSpec((1, H, W, C + 1), lambda b: (b, 0, 0, 0))],
        out_specs=(pl.BlockSpec((1, H, W, C), lambda b: (b, 0, 0, 0)),
                   pl.BlockSpec((1, 2, H, W), lambda b: (b, 0, 0, 0)),
                   pl.BlockSpec((1, 1, C), lambda b: (b, 0, 0)),
                   pl.BlockSpec((1, 1, C), lambda b: (b, 0, 0))),
        compiler_params=_cp(("parallel",)),
    )(xcm, ycm)


def _msca_gate_kernel(w7_ref, pp_ref, xl_ref, gap_ref, gmp_ref,
                      xcm_ref, ycm_ref, o_ref, *, H, W, C):
    cmean = pp_ref[0, 0].astype(jnp.float32)       # (H+6, W+6)
    cmax = pp_ref[0, 1].astype(jnp.float32)
    chp = jnp.zeros((H, W), jnp.float32)
    for t in range(49):
        dy, dx = t // 7, t % 7
        chp = (chp
               + w7_ref[2 * t] * cmean[dy:dy + H, dx:dx + W]
               + w7_ref[2 * t + 1] * cmax[dy:dy + H, dx:dx + W])
    xlg = (xl_ref[0].astype(jnp.float32)
           + gap_ref[0].astype(jnp.float32)
           + gmp_ref[0].astype(jnp.float32)
           + chp[:, :, None])
    wei = jax.nn.sigmoid(xlg)
    xc = xcm_ref[0].astype(jnp.float32)[:, :, :C]
    yc = ycm_ref[0].astype(jnp.float32)[:, :, :C]
    o_ref[0] = (xc * wei + yc * (1.0 - wei)).astype(o_ref.dtype)


def msca_gate(w7, pool_pad, xl, gap_o, gmp_o, xcm, ycm):
    B, H, W, C = xl.shape
    return pl.pallas_call(
        functools.partial(_msca_gate_kernel, H=H, W=W, C=C),
        out_shape=jax.ShapeDtypeStruct((B, H, W, C), BF16),
        grid=(B,),
        in_specs=[
            pl.BlockSpec(memory_space=pltpu.MemorySpace.SMEM),
            pl.BlockSpec((1, 2, H + 6, W + 6), lambda b: (b, 0, 0, 0)),
            pl.BlockSpec((1, H, W, C), lambda b: (b, 0, 0, 0)),
            pl.BlockSpec((1, 1, C), lambda b: (b, 0, 0)),
            pl.BlockSpec((1, 1, C), lambda b: (b, 0, 0)),
            pl.BlockSpec((1, H, W, C + 1), lambda b: (b, 0, 0, 0)),
            pl.BlockSpec((1, H, W, C + 1), lambda b: (b, 0, 0, 0)),
        ],
        out_specs=pl.BlockSpec((1, H, W, C), lambda b: (b, 0, 0, 0)),
        compiler_params=_cp(("parallel",)),
    )(w7.astype(F32), pool_pad, xl, gap_o, gmp_o, xcm, ycm)


# ---------------------------------------------------------------------------
# Deterministic parameter construction (stub weights)
# ---------------------------------------------------------------------------
class PGen:
    def __init__(self, key):
        self._key = key
        self._i = 0

    def __call__(self, shape, scale=0.05, offset=0.0):
        self._i += 1
        k = jax.random.fold_in(self._key, self._i)
        return (offset + scale * jax.random.normal(k, shape)).astype(F32)


def make_conv(pg, cin, cout, k, bias=False, bn=True):
    fan_in = cin * k * k
    if k == 1:
        w = pg((cin, cout), scale=(2.0 / fan_in) ** 0.5)
    else:
        w = pg((k * k, cin, cout), scale=(2.0 / fan_in) ** 0.5)
    b = pg((cout,), 0.02) if bias else jnp.zeros((cout,), F32)
    if bn:   # fold eval-mode BatchNorm into per-channel affine
        gamma = 1.0 + pg((cout,), 0.05)
        beta = pg((cout,), 0.05)
        mean = pg((cout,), 0.05)
        var = 1.0 + jnp.abs(pg((cout,), 0.05))
        s = gamma / jnp.sqrt(var + 1e-5)
        t = beta + (b - mean) * s
    else:
        s = jnp.ones((cout,), F32)
        t = b
    return dict(w=w, s=s, t=t, k=k)


def make_linear(pg, cin, cout):
    return dict(w=pg((cin, cout), scale=(1.0 / cin) ** 0.5),
                s=jnp.ones((cout,), F32), t=pg((cout,), 0.02))


def make_ln(pg, c):
    return dict(g=1.0 + pg((c,), 0.05), b=pg((c,), 0.05))


def apply_conv(p, x_nhwc, act="none"):
    if p["k"] == 1:
        B, H, W, C = x_nhwc.shape
        out = mm_affine_act(x_nhwc.reshape(B * H * W, C), p["w"], p["s"],
                            p["t"], act)
        return out.reshape(B, H, W, -1)
    return conv3x3(x_nhwc, p["w"], p["s"], p["t"], act)


def upsample(x, factor):
    B, H, W, C = x.shape
    return jax.image.resize(x, (B, H * factor, W * factor, C),
                            method="bilinear").astype(x.dtype)


# ---------------------------------------------------------------------------
# MSCA_2 / ACFM / Fusion
# ---------------------------------------------------------------------------
def make_msca(pg, c, r=4):
    co = max(1, c // r)
    return dict(
        la1=make_conv(pg, c, co, 1, bias=True), la2=make_conv(pg, co, c, 1, bias=True),
        gap1=make_conv(pg, c, co, 1, bias=True), gap2=make_conv(pg, co, c, 1, bias=True),
        gmp1=make_conv(pg, c, co, 1, bias=True), gmp2=make_conv(pg, co, c, 1, bias=True),
        c7=pg((98,), scale=(2.0 / 98.0) ** 0.5),
    )


def _fuse_convs(a, b):
    # concat output channels of two 3x3 convs -> one conv call, one input read
    return dict(w=jnp.concatenate([a["w"], b["w"]], axis=-1),
                s=jnp.concatenate([a["s"], b["s"]]),
                t=jnp.concatenate([a["t"], b["t"]]), k=3)


def make_acfm(pg, c):
    conv_x = make_conv(pg, c, c, 3)
    conv_mask_x = make_conv(pg, c, 1, 3)
    conv_y = make_conv(pg, c, c, 3)
    conv_mask_y = make_conv(pg, c, 1, 3)
    return dict(
        msca=make_msca(pg, c),
        convxm=_fuse_convs(conv_x, conv_mask_x),
        convym=_fuse_convs(conv_y, conv_mask_y),
    )


def apply_acfm(p, x, y):
    B, H, W, C = x.shape
    # fused conv_x | conv_mask_x (relu; mask sigmoid applied in acfm_mix)
    xcm = conv3x3(x, p["convxm"]["w"], p["convxm"]["s"], p["convxm"]["t"], "relu")
    ycm = conv3x3(y, p["convym"]["w"], p["convym"]["s"], p["convym"]["t"], "relu")

    z, pool, gap, gmp = acfm_mix(xcm, ycm, C)
    M = B * H * W
    z2d = z.reshape(M, C)

    mp = p["msca"]
    h = mm_affine_act(z2d, mp["la1"]["w"], mp["la1"]["s"], mp["la1"]["t"], "relu")
    xl = mm_affine_act(h, mp["la2"]["w"], mp["la2"]["s"],
                       mp["la2"]["t"]).reshape(B, H, W, C)
    g = mm_affine_act(gap.reshape(B, C), mp["gap1"]["w"], mp["gap1"]["s"],
                      mp["gap1"]["t"], "relu")
    gap_o = mm_affine_act(g, mp["gap2"]["w"], mp["gap2"]["s"], mp["gap2"]["t"],
                          out_dtype=F32).reshape(B, 1, C)
    m = mm_affine_act(gmp.reshape(B, C), mp["gmp1"]["w"], mp["gmp1"]["s"],
                      mp["gmp1"]["t"], "relu")
    gmp_o = mm_affine_act(m, mp["gmp2"]["w"], mp["gmp2"]["s"], mp["gmp2"]["t"],
                          out_dtype=F32).reshape(B, 1, C)

    pool_pad = jnp.pad(pool, ((0, 0), (0, 0), (3, 3), (3, 3)))
    return msca_gate(mp["c7"], pool_pad, xl, gap_o, gmp_o, xcm, ycm)


def make_fusion(pg):
    return dict(
        acfm=[make_acfm(pg, c) for c in (64, 128, 320, 512)],
        convr1=make_conv(pg, 256, 128, 1),
        convr2=make_conv(pg, 512, 320, 1),
        convr3=make_conv(pg, 1024, 512, 1),
    )


def apply_fusion(p, xs, ys):
    outs = []
    for i in range(4):
        y = ys[i]
        cy = y.shape[-1]
        if cy == 256:
            y = apply_conv(p["convr1"], y)
        elif cy == 512:
            y = apply_conv(p["convr2"], y)
        elif cy == 1024:
            y = apply_conv(p["convr3"], y)
        outs.append(apply_acfm(p["acfm"][i], xs[i], y))
    return outs


# ---------------------------------------------------------------------------
# Bridge (M_EfficientSelfAtten + MixFFN, MISSFormer-style)
# ---------------------------------------------------------------------------
def make_attn(pg, dims, rr):
    sr = [None if r == 1 else make_linear(pg, r * r * dims, dims) for r in rr]
    return dict(q=make_linear(pg, dims, dims), kv=make_linear(pg, dims, 2 * dims),
                proj=make_linear(pg, dims, dims), sr=sr, rr=tuple(rr), dims=dims)


def apply_attn(p, cs):
    dims = p["dims"]
    B = cs[0].shape[0]
    toks = [c.reshape(B, -1, dims) for c in cs]
    lens = [t.shape[1] for t in toks]
    x = jnp.concatenate(toks, axis=1)
    Ntot = x.shape[1]
    q = mm_affine_act(x.reshape(-1, dims), p["q"]["w"], p["q"]["s"],
                      p["q"]["t"]).reshape(B, Ntot, dims)
    reds = []
    for t, r, srp in zip(toks, p["rr"], p["sr"]):
        if r == 1:
            reds.append(t)
        else:
            n = t.shape[1]
            tt = t.reshape(B * (n // (r * r)), r * r * dims)
            reds.append(mm_affine_act(tt, srp["w"], srp["s"],
                                      srp["t"]).reshape(B, n // (r * r), dims))
    xr = jnp.concatenate(reds, axis=1)
    kv = mm_affine_act(xr.reshape(-1, dims), p["kv"]["w"], p["kv"]["s"],
                       p["kv"]["t"]).reshape(B, xr.shape[1], 2 * dims)
    k, v = kv[..., :dims], kv[..., dims:]
    o = attention(q, k, v, scale=dims ** -0.5)
    o = mm_affine_act(o.reshape(-1, dims), p["proj"]["w"], p["proj"]["s"],
                      p["proj"]["t"]).reshape(B, Ntot, dims)
    return (o[:, :lens[0]], o[:, lens[0]:lens[0] + lens[1]],
            o[:, lens[0] + lens[1]:])


def make_mixffn(pg, c1, c2):
    return dict(fc1=make_linear(pg, c1, c2), fc2=make_linear(pg, c2, c1),
                dw_w=pg((9, c2), scale=(2.0 / 9.0) ** 0.5), dw_b=pg((c2,), 0.02))


def apply_mixffn(p, x_bnc, H, W):
    B, N, c1 = x_bnc.shape
    h = mm_affine_act(x_bnc.reshape(B * N, c1), p["fc1"]["w"], p["fc1"]["s"],
                      p["fc1"]["t"])
    c2 = h.shape[-1]
    h = dwconv3x3(h.reshape(B, H, W, c2), p["dw_w"], p["dw_b"], act="gelu")
    out = mm_affine_act(h.reshape(B * N, c2), p["fc2"]["w"], p["fc2"]["s"],
                        p["fc2"]["t"])
    return out.reshape(B, N, c1)


def make_bridge_layer(pg, dims, rr):
    return dict(
        norm10=make_ln(pg, dims * 2), norm11=make_ln(pg, dims * 5), norm12=make_ln(pg, dims * 8),
        attn=make_attn(pg, dims, rr),
        norm20=make_ln(pg, dims * 2), norm21=make_ln(pg, dims * 5), norm22=make_ln(pg, dims * 8),
        mixffn2=make_mixffn(pg, dims * 2, dims * 8),
        mixffn3=make_mixffn(pg, dims * 5, dims * 20),
        mixffn4=make_mixffn(pg, dims * 8, dims * 32),
    )


def _ln_map(lnp, x_nhwc, res=None):
    B, H, W, C = x_nhwc.shape
    r2 = None if res is None else res.reshape(B * H * W, C)
    out = layernorm(x_nhwc.reshape(B * H * W, C), lnp["g"], lnp["b"], res=r2)
    return out.reshape(B, H, W, C)


def apply_bridge_layer(p, inputs, H0, W0):
    if len(inputs) == 4:
        _, c2, c3, c4 = inputs
    else:
        c2, c3, c4 = inputs
    B, H2, W2, C2 = c2.shape
    _, H3, W3, C3 = c3.shape
    _, H4, W4, C4 = c4.shape
    c2n = _ln_map(p["norm10"], c2)
    c3n = _ln_map(p["norm11"], c3)
    c4n = _ln_map(p["norm12"], c4)
    a2, a3, a4 = apply_attn(p["attn"], [c2n, c3n, c4n])
    c2fa = a2.reshape(B, H2, W2, C2)
    c3fa = a3.reshape(B, H3, W3, C3)
    c4fa = a4.reshape(B, H4, W4, C4)
    tx2 = _ln_map(p["norm20"], c2fa, res=c2)
    tx3 = _ln_map(p["norm21"], c3fa, res=c3)
    tx4 = _ln_map(p["norm22"], c4fa, res=c4)
    m2f = apply_mixffn(p["mixffn2"], tx2.reshape(B, -1, C2), H0 // 2, W0 // 2).reshape(B, H2, W2, C2)
    m3f = apply_mixffn(p["mixffn3"], tx3.reshape(B, -1, C3), H0 // 4, W0 // 4).reshape(B, H3, W3, C3)
    m4f = apply_mixffn(p["mixffn4"], tx4.reshape(B, -1, C4), H0 // 8, W0 // 8).reshape(B, H4, W4, C4)
    return [m2f + tx2, m3f + tx3, m4f + tx4]


def make_bridge_block(pg, dims, head, rr):
    # original constructs 4 bridge layers but only applies 3 in forward.
    return [make_bridge_layer(pg, dims, rr) for _ in range(3)]


def apply_bridge_block(ps, fusion_lists):
    H0, W0 = fusion_lists[0].shape[1], fusion_lists[0].shape[2]
    b = apply_bridge_layer(ps[0], fusion_lists, H0, W0)
    b = apply_bridge_layer(ps[1], b, H0, W0)
    b = apply_bridge_layer(ps[2], b, H0, W0)
    return b


# ---------------------------------------------------------------------------
# MFF + prediction head (concat-free via multi-input conv3x3)
# ---------------------------------------------------------------------------
def make_mff(pg):
    return dict(
        conv4=make_conv(pg, 1024, 320, 3), conv3=make_conv(pg, 960, 128, 3),
        conv2=make_conv(pg, 384, 64, 3),
        last_conv4=make_conv(pg, 512, 320, 3), last_conv3=make_conv(pg, 512, 128, 3),
        last_conv2=make_conv(pg, 512, 64, 3),
        # MFF.conv1 (192->64) result is unused by DualFormer.forward -> omitted.
    )


def apply_mff(p, fist_fusion, in_list, last_fusion):
    last_out = last_fusion
    out4c = conv3x3([in_list[-1], last_out],
                    p["conv4"]["w"], p["conv4"]["s"], p["conv4"]["t"])
    up_out4 = upsample(out4c, 2)
    last_out4 = upsample(conv3x3(last_out, p["last_conv4"]["w"],
                                 p["last_conv4"]["s"], p["last_conv4"]["t"]), 2)
    out3c = conv3x3([in_list[-2], up_out4, last_out4],
                    p["conv3"]["w"], p["conv3"]["s"], p["conv3"]["t"])
    up_out3 = upsample(out3c, 2)
    last_out3 = upsample(conv3x3(last_out, p["last_conv3"]["w"],
                                 p["last_conv3"]["s"], p["last_conv3"]["t"]), 4)
    out2c = conv3x3([in_list[-3], up_out3, last_out3],
                    p["conv2"]["w"], p["conv2"]["s"], p["conv2"]["t"])
    up_out2 = upsample(out2c, 2)
    last_out2 = upsample(conv3x3(last_out, p["last_conv2"]["w"],
                                 p["last_conv2"]["s"], p["last_conv2"]["t"]), 8)
    out1 = jnp.concatenate([fist_fusion, up_out2, last_out2], axis=-1)
    # TODO(synk): gt-supervised BCE side branches inactive (gt=None path only).
    return out1, 0.0


# ---------------------------------------------------------------------------
# Backbone stubs (deterministic patch embeddings) and DualFormer
# ---------------------------------------------------------------------------
def make_patch_embed(pg, cin, cout, patch):
    return dict(w=pg((cin * patch * patch, cout),
                     scale=(1.0 / (cin * patch * patch)) ** 0.5),
                s=jnp.ones((cout,), F32), t=pg((cout,), 0.02), patch=patch)


def apply_patch_embed(p, x_nhwc):
    B, H, W, C = x_nhwc.shape
    ph = p["patch"]
    Ho, Wo = H // ph, W // ph
    cols = (x_nhwc.reshape(B, Ho, ph, Wo, ph, C)
            .transpose(0, 1, 3, 2, 4, 5)
            .reshape(B * Ho * Wo, ph * ph * C))
    out = mm_affine_act(cols, p["w"], p["s"], p["t"])
    return out.reshape(B, Ho, Wo, -1)


def make_dualformer(key):
    pg = PGen(key)
    return dict(
        pvt=[make_patch_embed(pg, 3, c, s) for c, s in zip((64, 128, 320, 512), (4, 8, 16, 32))],
        res=[make_patch_embed(pg, 3, c, s) for c, s in zip((64, 256, 512, 1024), (4, 8, 16, 32))],
        fusion=make_fusion(pg),
        bridge=make_bridge_block(pg, 64, 1, (1, 2, 4)),
        mff=make_mff(pg),
        pred=make_conv(pg, 64 * 3, 1, 1, bias=True, bn=False),
        # note: DualFormer.last_conv is defined but never used in forward -> omitted.
    )


def dualformer_forward(params, x_nchw):
    x = jnp.transpose(x_nchw, (0, 2, 3, 1)).astype(BF16)     # single NCHW->NHWC change
    pvt_lists = [apply_patch_embed(p, x) for p in params["pvt"]]
    res_lists = [apply_patch_embed(p, x) for p in params["res"]]
    fusion_lists = apply_fusion(params["fusion"], pvt_lists, res_lists)
    bridges = apply_bridge_block(params["bridge"], fusion_lists)
    out1_cat, bce_loss = apply_mff(params["mff"], fusion_lists[0], bridges,
                                   fusion_lists[-1])
    pred = apply_conv(params["pred"], out1_cat)               # (B, H/4, W/4, 1)
    pred = upsample(pred, 4)
    pred = jnp.transpose(pred, (0, 3, 1, 2)).astype(F32)      # back to NCHW
    return pred, bce_loss


if __name__ == "__main__":
    key = jax.random.PRNGKey(0)
    params = make_dualformer(jax.random.fold_in(key, 1))
    x = jax.random.normal(jax.random.fold_in(key, 2), (2, 3, 64, 64), F32)
    pred, loss = dualformer_forward(params, x)
    jax.block_until_ready(pred)
    assert pred.shape == (2, 1, 64, 64), pred.shape
    assert bool(jnp.all(jnp.isfinite(pred)))
    print("KERNEL_OK")
</pallas_src>

<mosaic_0001>
module attributes {stable_mosaic.version = 11 : i64} {
  func.func @_mm1_kernel(%arg0: i32, %arg1: i32, %arg2: memref<512x48xbf16, #tpu.memory_space<vmem>>, %arg3: memref<48x64xbf16, #tpu.memory_space<vmem>>, %arg4: memref<1x64xf32, #tpu.memory_space<vmem>>, %arg5: memref<1x64xf32, #tpu.memory_space<vmem>>, %arg6: memref<512x64xbf16, #tpu.memory_space<vmem>>) attributes {dimension_semantics = [#tpu.dimension_semantics<parallel>, #tpu.dimension_semantics<parallel>], iteration_bounds = array<i64: 1, 1>, scalar_prefetch = 0 : i64, scratch_operands = 0 : i64, tpu.core_type = #tpu.core_type<tc>, window_params = [{transform_indices = @transform_0, window_bounds = array<i64: 512, 48>}, {transform_indices = @transform_1, window_bounds = array<i64: 48, 64>}, {transform_indices = @transform_2, window_bounds = array<i64: 1, 64>}, {transform_indices = @transform_3, window_bounds = array<i64: 1, 64>}, {transform_indices = @transform_4, window_bounds = array<i64: 512, 64>}]} {
    %c0 = arith.constant 0 : index
    %c0_0 = arith.constant 0 : index
    %0 = vector.load %arg2[%c0, %c0_0] : memref<512x48xbf16, #tpu.memory_space<vmem>>, vector<512x48xbf16>
    %c0_1 = arith.constant 0 : index
    %c0_2 = arith.constant 0 : index
    %1 = vector.load %arg3[%c0_1, %c0_2] : memref<48x64xbf16, #tpu.memory_space<vmem>>, vector<48x64xbf16>
    %cst = arith.constant dense<0.000000e+00> : vector<512x64xf32>
    %2 = tpu.matmul %0, %1, %cst {dimension_numbers = #tpu.dot_dimension_numbers<[1], [0], [0], [1], [0, 0, 1, 1], [], []>} : vector<512x48xbf16>, vector<48x64xbf16>, vector<512x64xf32> -> vector<512x64xf32>
    %c0_3 = arith.constant 0 : index
    %c0_4 = arith.constant 0 : index
    %3 = vector.load %arg4[%c0_3, %c0_4] : memref<1x64xf32, #tpu.memory_space<vmem>>, vector<1x64xf32>
    %4 = vector.broadcast %3 : vector<1x64xf32> to vector<512x64xf32>
    %5 = arith.mulf %2, %4 : vector<512x64xf32>
    %c0_5 = arith.constant 0 : index
    %c0_6 = arith.constant 0 : index
    %6 = vector.load %arg5[%c0_5, %c0_6] : memref<1x64xf32, #tpu.memory_space<vmem>>, vector<1x64xf32>
    %7 = vector.broadcast %6 : vector<1x64xf32> to vector<512x64xf32>
    %8 = arith.addf %5, %7 : vector<512x64xf32>
    %9 = arith.truncf %8 : vector<512x64xf32> to vector<512x64xbf16>
    %c0_7 = arith.constant 0 : index
    %c0_8 = arith.constant 0 : index
    %10 = vector.load %arg6[%c0_7, %c0_8] : memref<512x64xbf16, #tpu.memory_space<vmem>>, vector<512x64xbf16>
    tpu.vector_store %arg6[%c0_7, %c0_8], %9 {strides = array<i32>} : memref<512x64xbf16, #tpu.memory_space<vmem>>, vector<512x64xbf16>,
    return
  }
  func.func @transform_0(%arg0: i32, %arg1: i32) -> (i32, i32) {
    %c0_i32 = arith.constant 0 : i32
    %c0_i32_0 = arith.constant 0 : i32
    return %arg0, %c0_i32 : i32, i32
  }
  func.func @transform_1(%arg0: i32, %arg1: i32) -> (i32, i32) {
    %c0_i32 = arith.constant 0 : i32
    %c0_i32_0 = arith.constant 0 : i32
    return %c0_i32, %arg1 : i32, i32
  }
  func.func @transform_2(%arg0: i32, %arg1: i32) -> (i32, i32) {
    %c0_i32 = arith.constant 0 : i32
    %c0_i32_0 = arith.constant 0 : i32
    return %c0_i32, %arg1 : i32, i32
  }
  func.func @transform_3(%arg0: i32, %arg1: i32) -> (i32, i32) {
    %c0_i32 = arith.constant 0 : i32
    %c0_i32_0 = arith.constant 0 : i32
    return %c0_i32, %arg1 : i32, i32
  }
  func.func @transform_4(%arg0: i32, %arg1: i32) -> (i32, i32) {
    %c0_i32 = arith.constant 0 : i32
    return %arg0, %arg1 : i32, i32
  }
}

</mosaic_0001>

<bundles_post_ra>
// kernel: tpu_custom_call.1
= control target key start
LH: loop header
LB: loop body
LE: loop exit
PB: predicated region body
PF: predicated region fallthrough
CT: control target
= control target key end

     0   :  { %vm266_vm0 = vcmask 392192   ;;  %vm1050_vm1 = vcmask 519168   ;;  %s2018_s1 = inlined_call_operand.vmem [shape: bf16[48,64], index: 1, kind: input, shape index: {}]   ;;  %s2019_s0 = inlined_call_operand.vmem [shape: bf16[512,48], index: 0, kind: input, shape index: {}]   ;;  %s2020_s2 = inlined_call_operand.vmem [shape: f32[1,64], index: 2, kind: input, shape index: {}]   ;;  %s2021_s3 = inlined_call_operand.vmem [shape: f32[1,64], index: 3, kind: input, shape index: {}]   ;;  %s2022_s4 = inlined_call_operand.vmem [shape: bf16[512,64], index: 4, kind: output, shape index: {}]  }
   0x1   :  { %v1427_v0 = vld [vmem:[%s2018_s1 + $0x10] sm:$0xff]   ;;  %v1428_v1 = vld [vmem:[%s2018_s1 + $0x8] sm:$0xff]   ;;  %v1429_v2 = vld [vmem:[%s2018_s1] sm:$0xff]  }
   0x2   :  { %1351 = vmatprep.subr.bf16.mxu0 %v1427_v0  ;;  %1421 = vmatprep.subr.bf16.mxu1 %v1427_v0  ;;  %v1430_v3 = vld [vmem:[%s2019_s0] sm:$0xff]   ;;  %v1432_v5 = vld [vmem:[%s2019_s0 + $0x8] sm:$0xff]   ;;  %v1434_v7 = vld [vmem:[%s2019_s0 + $0x10] sm:$0xff]  }
   0x3   :  { %1352 = vmatpush3.bf16.msra.mxu0 %v1427_v0  ;;  %1424 = vmatpush3.bf16.msra.mxu1 %v1427_v0  ;;  %v1431_v4 = vld [vmem:[%s2019_s0 + $0x80] sm:$0xff]   ;;  %v1433_v6 = vld [vmem:[%s2019_s0 + $0x88] sm:$0xff]   ;;  %v1435_v8 = vld [vmem:[%s2019_s0 + $0x90] sm:$0xff]  }
   0x4   :  { %1353 = vmatprep.subr.bf16.mxu0 %v1428_v1  ;;  %1422 = vmatprep.subr.bf16.mxu1 %v1428_v1  ;;  %v1436_v9 = vld [vmem:[%s2019_s0 + $0x18] sm:$0xff]   ;;  %v1438_v11 = vld [vmem:[%s2019_s0 + $0x20] sm:$0xff]   ;;  %v1440_v13 = vld [vmem:[%s2019_s0 + $0x28] sm:$0xff]  }
   0x5   :  { %1357 = vmatprep.mubr.msk.bf16.mxu0 %vm266_vm0, %v1430_v3  ;;  %1389 = vmatprep.mubr.msk.bf16.mxu1 %vm266_vm0, %v1431_v4  ;;  %v1437_v10 = vld [vmem:[%s2019_s0 + $0x98] sm:$0xff]   ;;  %v1439_v12 = vld [vmem:[%s2019_s0 + $0xa0] sm:$0xff]   ;;  %v1441_v14 = vld [vmem:[%s2019_s0 + $0xa8] sm:$0xff]  }
   0x6   :  { %v1442_v15 = vld [vmem:[%s2019_s0 + $0x30] sm:$0xff]   ;;  %v1444_v17 = vld [vmem:[%s2019_s0 + $0x38] sm:$0xff]   ;;  %v1446_v19 = vld [vmem:[%s2019_s0 + $0x40] sm:$0xff]  }
   0x7   :  { %1354 = vmatpush3.bf16.msra.mxu0 %v1428_v1  ;;  %1425 = vmatpush3.bf16.msra.mxu1 %v1428_v1  ;;  %v1443_v16 = vld [vmem:[%s2019_s0 + $0xb0] sm:$0xff]   ;;  %v1445_v18 = vld [vmem:[%s2019_s0 + $0xb8] sm:$0xff]   ;;  %v1447_v20 = vld [vmem:[%s2019_s0 + $0xc0] sm:$0xff]  }
   0x8   :  { %1355 = vmatprep.subr.bf16.mxu0 %v1429_v2  ;;  %1423 = vmatprep.subr.bf16.mxu1 %v1429_v2  ;;  %v1448_v21 = vld [vmem:[%s2019_s0 + $0x48] sm:$0xff]   ;;  %v1450_v23 = vld [vmem:[%s2019_s0 + $0x50] sm:$0xff]   ;;  %v1452_v25 = vld [vmem:[%s2019_s0 + $0x58] sm:$0xff]  }
   0x9   :  { %v1449_v22 = vld [vmem:[%s2019_s0 + $0xc8] sm:$0xff]   ;;  %v1451_v24 = vld [vmem:[%s2019_s0 + $0xd0] sm:$0xff]   ;;  %v1453_v26 = vld [vmem:[%s2019_s0 + $0xd8] sm:$0xff]  }
   0xa   :  { %v1454_v27 = vld [vmem:[%s2019_s0 + $0x60] sm:$0xff]   ;;  %v1456_v29 = vld [vmem:[%s2019_s0 + $0x68] sm:$0xff]   ;;  %v1458_v31 = vld [vmem:[%s2019_s0 + $0x70] sm:$0xff]  }
   0xb   :  { %1356 = vmatpush3.bf16.msra.mxu0 %v1429_v2  ;;  %1426 = vmatpush3.bf16.msra.mxu1 %v1429_v2  ;;  %v1455_v28 = vld [vmem:[%s2019_s0 + $0xe0] sm:$0xff]   ;;  %v1457_v30 = vld [vmem:[%s2019_s0 + $0xe8] sm:$0xff]   ;;  %v1459_v32 = vld [vmem:[%s2019_s0 + $0xf0] sm:$0xff]  }
   0xc   :  { %v1460_v33 = vld [vmem:[%s2019_s0 + $0x78] sm:$0xff]   ;;  %v1627_v35 = vld [vmem:[%s2020_s2] ss:$0 sm:$0xff] }
   0xd   :  { %v1461_v34 = vld [vmem:[%s2019_s0 + $0xf8] sm:$0xff]   ;;  %v1632_v37 = vld [vmem:[%s2021_s3] ss:$0 sm:$0xff] }
   0xe   :  { %1358 = vmatmul.mubr.msk.bf16.vlgmr.msra.gmra.mxu0 %vm266_vm0, %v1432_v5  ;;  %1390 = vmatmul.mubr.msk.bf16.vlgmr.msra.gmra.mxu1 %vm266_vm0, %v1433_v6 }
   0xf   :  { %1361 = vmatprep.mubr.msk.bf16.mxu0 %vm266_vm0, %v1434_v7  ;;  %1393 = vmatprep.mubr.msk.bf16.mxu1 %vm266_vm0, %v1435_v8 }
  0x16   :  { %1362 = vmatmul.mubr.msk.bf16.gmra.mxu0 %vm266_vm0, %v1436_v9  ;;  %1394 = vmatmul.mubr.msk.bf16.gmra.mxu1 %vm266_vm0, %v1437_v10 }
  0x17   :  { %1365 = vmatprep.mubr.msk.bf16.mxu0 %vm266_vm0, %v1438_v11  ;;  %1397 = vmatprep.mubr.msk.bf16.mxu1 %vm266_vm0, %v1439_v12 }
  0x1e   :  { %1366 = vmatmul.mubr.msk.bf16.gmra.mxu0 %vm266_vm0, %v1440_v13  ;;  %1398 = vmatmul.mubr.msk.bf16.gmra.mxu1 %vm266_vm0, %v1441_v14 }
  0x1f   :  { %1369 = vmatprep.mubr.msk.bf16.mxu0 %vm266_vm0, %v1442_v15  ;;  %1401 = vmatprep.mubr.msk.bf16.mxu1 %vm266_vm0, %v1443_v16 }
  0x26   :  { %1370 = vmatmul.mubr.msk.bf16.gmra.mxu0 %vm266_vm0, %v1444_v17  ;;  %1402 = vmatmul.mubr.msk.bf16.gmra.mxu1 %vm266_vm0, %v1445_v18 }
  0x27   :  { %1373 = vmatprep.mubr.msk.bf16.mxu0 %vm266_vm0, %v1446_v19  ;;  %1405 = vmatprep.mubr.msk.bf16.mxu1 %vm266_vm0, %v1447_v20 }
  0x2e   :  { %1374 = vmatmul.mubr.msk.bf16.gmra.mxu0 %vm266_vm0, %v1448_v21  ;;  %1406 = vmatmul.mubr.msk.bf16.gmra.mxu1 %vm266_vm0, %v1449_v22 }
  0x2f   :  { %1377 = vmatprep.mubr.msk.bf16.mxu0 %vm266_vm0, %v1450_v23  ;;  %1409 = vmatprep.mubr.msk.bf16.mxu1 %vm266_vm0, %v1451_v24 }
  0x36   :  { %1378 = vmatmul.mubr.msk.bf16.gmra.mxu0 %vm266_vm0, %v1452_v25  ;;  %1410 = vmatmul.mubr.msk.bf16.gmra.mxu1 %vm266_vm0, %v1453_v26 }
  0x37   :  { %1381 = vmatprep.mubr.msk.bf16.mxu0 %vm266_vm0, %v1454_v27  ;;  %1413 = vmatprep.mubr.msk.bf16.mxu1 %vm266_vm0, %v1455_v28 }
  0x3e   :  { %1382 = vmatmul.mubr.msk.bf16.gmra.mxu0 %vm266_vm0, %v1456_v29  ;;  %1414 = vmatmul.mubr.msk.bf16.gmra.mxu1 %vm266_vm0, %v1457_v30 }
  0x3f   :  { %1385 = vmatprep.mubr.msk.bf16.mxu0 %vm266_vm0, %v1458_v31  ;;  %1417 = vmatprep.mubr.msk.bf16.mxu1 %vm266_vm0, %v1459_v32 }
  0x46   :  { %1386 = vmatmul.mubr.msk.bf16.gmra.mxu0 %vm266_vm0, %v1460_v33  ;;  %1418 = vmatmul.mubr.msk.bf16.gmra.mxu1 %vm266_vm0, %v1461_v34 }
  0xce   :  { %v1359_v36 = vpop.f32.mrf.mxu0  ;;  %v1391_v38 = vpop.f32.mrf.mxu1 }
  0xcf   :  { %v661_v39 = vmul.f32 %v1359_v36, %v1627_v35  ;;  %v693_v40 = vmul.f32 %v1391_v38, %v1627_v35 }
  0xd0   :  { %v397_v41 = vpop.f32.mrf.mxu0  ;;  %v525_v42 = vpop.f32.mrf.mxu1 }
  0xd1   :  { %v732_v43 = vadd.f32 %v1632_v37, %v661_v39  ;;  %v764_v44 = vadd.f32 %v1632_v37, %v693_v40  ;;  %v659_v45 = vmul.f32 %v1627_v35, %v397_v41  ;;  %v691_v46 = vmul.f32 %v1627_v35, %v525_v42 }
  0xd2   :  { %v1360_v47 = vpop.f32.mrf.mxu0  ;;  %v1392_v48 = vpop.f32.mrf.mxu1 }
  0xd3   :  { %v1254_v49 = vpack.c.bf16 %v732_v43, %v732_v43  ;;  %v1286_v50 = vpack.c.bf16 %v764_v44, %v764_v44  ;;  %v730_v51 = vadd.f32 %v1632_v37, %v659_v45  ;;  %v762_v52 = vadd.f32 %v1632_v37, %v691_v46 }
  0xd4   :  { %v662_v53 = vmul.f32 %v1360_v47, %v1627_v35  ;;  %v694_v54 = vmul.f32 %v1392_v48, %v1627_v35  ;;  %v400_v55 = vpop.f32.mrf.mxu0  ;;  %v528_v56 = vpop.f32.mrf.mxu1 }
  0xd5   :  { %1053 = vst.msk [vmem:[%s2022_s4 + $0x8] sm:$0xf] %vm1050_vm1, %v1254_v49  ;;  %1085 = vst.msk [vmem:[%s2022_s4 + $0x88] sm:$0xf] %vm1050_vm1, %v1286_v50  ;;  %v1252_v57 = vpack.c.bf16 %v730_v51, %v730_v51  ;;  %v1284_v58 = vpack.c.bf16 %v762_v52, %v762_v52  ;;  %v660_v59 = vmul.f32 %v1627_v35, %v400_v55 }
  0xd6   :  { %v692_v60 = vmul.f32 %v1627_v35, %v528_v56  ;;  %v733_v61 = vadd.f32 %v1632_v37, %v662_v53  ;;  %v765_v62 = vadd.f32 %v1632_v37, %v694_v54  ;;  %v1363_v63 = vpop.f32.mrf.mxu0  ;;  %v1395_v0 = vpop.f32.mrf.mxu1 }
  0xd7   :  { %1051 = vst.msk [vmem:[%s2022_s4] sm:$0xf] %vm1050_vm1, %v1252_v57  ;;  %1083 = vst.msk [vmem:[%s2022_s4 + $0x80] sm:$0xf] %vm1050_vm1, %v1284_v58  ;;  %v731_v1 = vadd.f32 %v1632_v37, %v660_v59  ;;  %v665_v3 = vmul.f32 %v1363_v63, %v1627_v35  ;;  %v697_v4 = vmul.f32 %v1395_v0, %v1627_v35 }
  0xd8   :  { %v763_v2 = vadd.f32 %v1632_v37, %v692_v60  ;;  %v1255_v5 = vpack.c.bf16 %v733_v61, %v733_v61  ;;  %v1287_v6 = vpack.c.bf16 %v765_v62, %v765_v62  ;;  %v413_v7 = vpop.f32.mrf.mxu0  ;;  %v541_v8 = vpop.f32.mrf.mxu1 }
  0xd9   :  { %v1253_v9 = vpack.c.bf16 %v731_v1, %v731_v1  ;;  %v736_v11 = vadd.f32 %v1632_v37, %v665_v3  ;;  %v768_v12 = vadd.f32 %v1632_v37, %v697_v4  ;;  %v663_v13 = vmul.f32 %v1627_v35, %v413_v7 }
  0xda   :  { %v1285_v10 = vpack.c.bf16 %v763_v2, %v763_v2  ;;  %1054 = vst.msk [vmem:[%s2022_s4 + $0xc] sm:$0xf] %vm1050_vm1, %v1255_v5  ;;  %1086 = vst.msk [vmem:[%s2022_s4 + $0x8c] sm:$0xf] %vm1050_vm1, %v1287_v6  ;;  %v695_v14 = vmul.f32 %v1627_v35, %v541_v8  ;;  %v1364_v15 = vpop.f32.mrf.mxu0  ;;  %v1396_v16 = vpop.f32.mrf.mxu1 }
  0xdb   :  { %1052 = vst.msk [vmem:[%s2022_s4 + $0x4] sm:$0xf] %vm1050_vm1, %v1253_v9  ;;  %v1258_v17 = vpack.c.bf16 %v736_v11, %v736_v11  ;;  %v1290_v18 = vpack.c.bf16 %v768_v12, %v768_v12  ;;  %v666_v19 = vmul.f32 %v1364_v15, %v1627_v35  ;;  %v698_v20 = vmul.f32 %v1396_v16, %v1627_v35 }
  0xdc   :  { %1084 = vst.msk [vmem:[%s2022_s4 + $0x84] sm:$0xf] %vm1050_vm1, %v1285_v10  ;;  %v734_v21 = vadd.f32 %v1632_v37, %v663_v13  ;;  %v766_v22 = vadd.f32 %v1632_v37, %v695_v14  ;;  %v416_v23 = vpop.f32.mrf.mxu0  ;;  %v544_v24 = vpop.f32.mrf.mxu1 }
  0xdd   :  { %1057 = vst.msk [vmem:[%s2022_s4 + $0x18] sm:$0xf] %vm1050_vm1, %v1258_v17  ;;  %1089 = vst.msk [vmem:[%s2022_s4 + $0x98] sm:$0xf] %vm1050_vm1, %v1290_v18  ;;  %v737_v25 = vadd.f32 %v1632_v37, %v666_v19  ;;  %v769_v26 = vadd.f32 %v1632_v37, %v698_v20  ;;  %v664_v27 = vmul.f32 %v1627_v35, %v416_v23 }
  0xde   :  { %v696_v28 = vmul.f32 %v1627_v35, %v544_v24  ;;  %v1256_v29 = vpack.c.bf16 %v734_v21, %v734_v21  ;;  %v1288_v30 = vpack.c.bf16 %v766_v22, %v766_v22  ;;  %v1367_v31 = vpop.f32.mrf.mxu0  ;;  %v1399_v32 = vpop.f32.mrf.mxu1 }
  0xdf   :  { %v1259_v33 = vpack.c.bf16 %v737_v25, %v737_v25  ;;  %v1291_v34 = vpack.c.bf16 %v769_v26, %v769_v26  ;;  %v735_v36 = vadd.f32 %v1632_v37, %v664_v27  ;;  %v669_v39 = vmul.f32 %v1367_v31, %v1627_v35 }
  0xe0   :  { %v767_v38 = vadd.f32 %v1632_v37, %v696_v28  ;;  %1055 = vst.msk [vmem:[%s2022_s4 + $0x10] sm:$0xf] %vm1050_vm1, %v1256_v29  ;;  %1087 = vst.msk [vmem:[%s2022_s4 + $0x90] sm:$0xf] %vm1050_vm1, %v1288_v30  ;;  %v701_v40 = vmul.f32 %v1399_v32, %v1627_v35  ;;  %v429_v41 = vpop.f32.mrf.mxu0  ;;  %v557_v42 = vpop.f32.mrf.mxu1 }
  0xe1   :  { %1058 = vst.msk [vmem:[%s2022_s4 + $0x1c] sm:$0xf] %vm1050_vm1, %v1259_v33  ;;  %1090 = vst.msk [vmem:[%s2022_s4 + $0x9c] sm:$0xf] %vm1050_vm1, %v1291_v34  ;;  %v1257_v43 = vpack.c.bf16 %v735_v36, %v735_v36  ;;  %v667_v45 = vmul.f32 %v1627_v35, %v429_v41  ;;  %v699_v46 = vmul.f32 %v1627_v35, %v557_v42 }
  0xe2   :  { %v1289_v44 = vpack.c.bf16 %v767_v38, %v767_v38  ;;  %v740_v47 = vadd.f32 %v1632_v37, %v669_v39  ;;  %v772_v48 = vadd.f32 %v1632_v37, %v701_v40  ;;  %v1368_v49 = vpop.f32.mrf.mxu0  ;;  %v1400_v50 = vpop.f32.mrf.mxu1 }
  0xe3   :  { %1056 = vst.msk [vmem:[%s2022_s4 + $0x14] sm:$0xf] %vm1050_vm1, %v1257_v43  ;;  %v738_v51 = vadd.f32 %v1632_v37, %v667_v45  ;;  %v770_v52 = vadd.f32 %v1632_v37, %v699_v46  ;;  %v670_v53 = vmul.f32 %v1368_v49, %v1627_v35  ;;  %v702_v54 = vmul.f32 %v1400_v50, %v1627_v35 }
  0xe4   :  { %1088 = vst.msk [vmem:[%s2022_s4 + $0x94] sm:$0xf] %vm1050_vm1, %v1289_v44  ;;  %v1262_v55 = vpack.c.bf16 %v740_v47, %v740_v47  ;;  %v1294_v56 = vpack.c.bf16 %v772_v48, %v772_v48  ;;  %v432_v57 = vpop.f32.mrf.mxu0  ;;  %v560_v58 = vpop.f32.mrf.mxu1 }
  0xe5   :  { %v1260_v59 = vpack.c.bf16 %v738_v51, %v738_v51  ;;  %v1292_v60 = vpack.c.bf16 %v770_v52, %v770_v52  ;;  %v741_v61 = vadd.f32 %v1632_v37, %v670_v53  ;;  %v773_v62 = vadd.f32 %v1632_v37, %v702_v54 }
  0xe6   :  { %1061 = vst.msk [vmem:[%s2022_s4 + $0x28] sm:$0xf] %vm1050_vm1, %v1262_v55  ;;  %1093 = vst.msk [vmem:[%s2022_s4 + $0xa8] sm:$0xf] %vm1050_vm1, %v1294_v56  ;;  %v668_v63 = vmul.f32 %v1627_v35, %v432_v57  ;;  %v700_v0 = vmul.f32 %v1627_v35, %v560_v58  ;;  %v1371_v1 = vpop.f32.mrf.mxu0  ;;  %v1403_v2 = vpop.f32.mrf.mxu1 }
  0xe7   :  { %1059 = vst.msk [vmem:[%s2022_s4 + $0x20] sm:$0xf] %vm1050_vm1, %v1260_v59  ;;  %1091 = vst.msk [vmem:[%s2022_s4 + $0xa0] sm:$0xf] %vm1050_vm1, %v1292_v60  ;;  %v1263_v3 = vpack.c.bf16 %v741_v61, %v741_v61  ;;  %v1295_v4 = vpack.c.bf16 %v773_v62, %v773_v62  ;;  %v673_v5 = vmul.f32 %v1371_v1, %v1627_v35 }
  0xe8   :  { %v705_v6 = vmul.f32 %v1403_v2, %v1627_v35  ;;  %v739_v7 = vadd.f32 %v1632_v37, %v668_v63  ;;  %v771_v8 = vadd.f32 %v1632_v37, %v700_v0  ;;  %v445_v9 = vpop.f32.mrf.mxu0  ;;  %v573_v10 = vpop.f32.mrf.mxu1 }
  0xe9   :  { %1062 = vst.msk [vmem:[%s2022_s4 + $0x2c] sm:$0xf] %vm1050_vm1, %v1263_v3  ;;  %1094 = vst.msk [vmem:[%s2022_s4 + $0xac] sm:$0xf] %vm1050_vm1, %v1295_v4  ;;  %v744_v11 = vadd.f32 %v1632_v37, %v673_v5  ;;  %v671_v13 = vmul.f32 %v1627_v35, %v445_v9  ;;  %v703_v14 = vmul.f32 %v1627_v35, %v573_v10 }
  0xea   :  { %v776_v12 = vadd.f32 %v1632_v37, %v705_v6  ;;  %v1261_v15 = vpack.c.bf16 %v739_v7, %v739_v7  ;;  %v1293_v16 = vpack.c.bf16 %v771_v8, %v771_v8  ;;  %v1372_v17 = vpop.f32.mrf.mxu0  ;;  %v1404_v18 = vpop.f32.mrf.mxu1 }
  0xeb   :  { %v1266_v19 = vpack.c.bf16 %v744_v11, %v744_v11  ;;  %v742_v21 = vadd.f32 %v1632_v37, %v671_v13  ;;  %v774_v22 = vadd.f32 %v1632_v37, %v703_v14  ;;  %v674_v23 = vmul.f32 %v1372_v17, %v1627_v35 }
  0xec   :  { %v1298_v20 = vpack.c.bf16 %v776_v12, %v776_v12  ;;  %1060 = vst.msk [vmem:[%s2022_s4 + $0x24] sm:$0xf] %vm1050_vm1, %v1261_v15  ;;  %1092 = vst.msk [vmem:[%s2022_s4 + $0xa4] sm:$0xf] %vm1050_vm1, %v1293_v16  ;;  %v706_v24 = vmul.f32 %v1404_v18, %v1627_v35  ;;  %v448_v25 = vpop.f32.mrf.mxu0  ;;  %v576_v26 = vpop.f32.mrf.mxu1 }
  0xed   :  { %1065 = vst.msk [vmem:[%s2022_s4 + $0x38] sm:$0xf] %vm1050_vm1, %v1266_v19  ;;  %v1264_v27 = vpack.c.bf16 %v742_v21, %v742_v21  ;;  %v1296_v28 = vpack.c.bf16 %v774_v22, %v774_v22  ;;  %v672_v29 = vmul.f32 %v1627_v35, %v448_v25  ;;  %v704_v30 = vmul.f32 %v1627_v35, %v576_v26 }
  0xee   :  { %1097 = vst.msk [vmem:[%s2022_s4 + $0xb8] sm:$0xf] %vm1050_vm1, %v1298_v20  ;;  %v745_v31 = vadd.f32 %v1632_v37, %v674_v23  ;;  %v777_v32 = vadd.f32 %v1632_v37, %v706_v24  ;;  %v1375_v33 = vpop.f32.mrf.mxu0  ;;  %v1407_v34 = vpop.f32.mrf.mxu1 }
  0xef   :  { %1063 = vst.msk [vmem:[%s2022_s4 + $0x30] sm:$0xf] %vm1050_vm1, %v1264_v27  ;;  %1095 = vst.msk [vmem:[%s2022_s4 + $0xb0] sm:$0xf] %vm1050_vm1, %v1296_v28  ;;  %v743_v36 = vadd.f32 %v1632_v37, %v672_v29  ;;  %v775_v38 = vadd.f32 %v1632_v37, %v704_v30  ;;  %v677_v39 = vmul.f32 %v1375_v33, %v1627_v35 }
  0xf0   :  { %v709_v40 = vmul.f32 %v1407_v34, %v1627_v35  ;;  %v1267_v41 = vpack.c.bf16 %v745_v31, %v745_v31  ;;  %v1299_v42 = vpack.c.bf16 %v777_v32, %v777_v32  ;;  %v461_v43 = vpop.f32.mrf.mxu0  ;;  %v589_v44 = vpop.f32.mrf.mxu1 }
  0xf1   :  { %v1265_v45 = vpack.c.bf16 %v743_v36, %v743_v36  ;;  %v1297_v46 = vpack.c.bf16 %v775_v38, %v775_v38  ;;  %v748_v47 = vadd.f32 %v1632_v37, %v677_v39  ;;  %v675_v49 = vmul.f32 %v1627_v35, %v461_v43 }
  0xf2   :  { %v780_v48 = vadd.f32 %v1632_v37, %v709_v40  ;;  %1066 = vst.msk [vmem:[%s2022_s4 + $0x3c] sm:$0xf] %vm1050_vm1, %v1267_v41  ;;  %1098 = vst.msk [vmem:[%s2022_s4 + $0xbc] sm:$0xf] %vm1050_vm1, %v1299_v42  ;;  %v707_v50 = vmul.f32 %v1627_v35, %v589_v44  ;;  %v1376_v51 = vpop.f32.mrf.mxu0  ;;  %v1408_v52 = vpop.f32.mrf.mxu1 }
  0xf3   :  { %1064 = vst.msk [vmem:[%s2022_s4 + $0x34] sm:$0xf] %vm1050_vm1, %v1265_v45  ;;  %1096 = vst.msk [vmem:[%s2022_s4 + $0xb4] sm:$0xf] %vm1050_vm1, %v1297_v46  ;;  %v1270_v53 = vpack.c.bf16 %v748_v47, %v748_v47  ;;  %v678_v55 = vmul.f32 %v1376_v51, %v1627_v35  ;;  %v710_v56 = vmul.f32 %v1408_v52, %v1627_v35 }
  0xf4   :  { %v1302_v54 = vpack.c.bf16 %v780_v48, %v780_v48  ;;  %v746_v57 = vadd.f32 %v1632_v37, %v675_v49  ;;  %v778_v58 = vadd.f32 %v1632_v37, %v707_v50  ;;  %v464_v59 = vpop.f32.mrf.mxu0  ;;  %v592_v60 = vpop.f32.mrf.mxu1 }
  0xf5   :  { %1069 = vst.msk [vmem:[%s2022_s4 + $0x48] sm:$0xf] %vm1050_vm1, %v1270_v53  ;;  %v749_v61 = vadd.f32 %v1632_v37, %v678_v55  ;;  %v781_v62 = vadd.f32 %v1632_v37, %v710_v56  ;;  %v676_v63 = vmul.f32 %v1627_v35, %v464_v59  ;;  %v708_v0 = vmul.f32 %v1627_v35, %v592_v60 }
  0xf6   :  { %1101 = vst.msk [vmem:[%s2022_s4 + $0xc8] sm:$0xf] %vm1050_vm1, %v1302_v54  ;;  %v1268_v1 = vpack.c.bf16 %v746_v57, %v746_v57  ;;  %v1300_v2 = vpack.c.bf16 %v778_v58, %v778_v58  ;;  %v1379_v3 = vpop.f32.mrf.mxu0  ;;  %v1411_v4 = vpop.f32.mrf.mxu1 }
  0xf7   :  { %v1271_v5 = vpack.c.bf16 %v749_v61, %v749_v61  ;;  %v1303_v6 = vpack.c.bf16 %v781_v62, %v781_v62  ;;  %v747_v7 = vadd.f32 %v1632_v37, %v676_v63  ;;  %v779_v8 = vadd.f32 %v1632_v37, %v708_v0 }
  0xf8   :  { %1067 = vst.msk [vmem:[%s2022_s4 + $0x40] sm:$0xf] %vm1050_vm1, %v1268_v1  ;;  %1099 = vst.msk [vmem:[%s2022_s4 + $0xc0] sm:$0xf] %vm1050_vm1, %v1300_v2  ;;  %v681_v9 = vmul.f32 %v1379_v3, %v1627_v35  ;;  %v713_v10 = vmul.f32 %v1411_v4, %v1627_v35  ;;  %v477_v11 = vpop.f32.mrf.mxu0  ;;  %v605_v12 = vpop.f32.mrf.mxu1 }
  0xf9   :  { %1070 = vst.msk [vmem:[%s2022_s4 + $0x4c] sm:$0xf] %vm1050_vm1, %v1271_v5  ;;  %1102 = vst.msk [vmem:[%s2022_s4 + $0xcc] sm:$0xf] %vm1050_vm1, %v1303_v6  ;;  %v1269_v13 = vpack.c.bf16 %v747_v7, %v747_v7  ;;  %v1301_v14 = vpack.c.bf16 %v779_v8, %v779_v8  ;;  %v679_v15 = vmul.f32 %v1627_v35, %v477_v11 }
  0xfa   :  { %v711_v16 = vmul.f32 %v1627_v35, %v605_v12  ;;  %v752_v17 = vadd.f32 %v1632_v37, %v681_v9  ;;  %v784_v18 = vadd.f32 %v1632_v37, %v713_v10  ;;  %v1380_v19 = vpop.f32.mrf.mxu0  ;;  %v1412_v20 = vpop.f32.mrf.mxu1 }
  0xfb   :  { %1068 = vst.msk [vmem:[%s2022_s4 + $0x44] sm:$0xf] %vm1050_vm1, %v1269_v13  ;;  %1100 = vst.msk [vmem:[%s2022_s4 + $0xc4] sm:$0xf] %vm1050_vm1, %v1301_v14  ;;  %v750_v21 = vadd.f32 %v1632_v37, %v679_v15  ;;  %v682_v23 = vmul.f32 %v1380_v19, %v1627_v35  ;;  %v714_v24 = vmul.f32 %v1412_v20, %v1627_v35 }
  0xfc   :  { %v782_v22 = vadd.f32 %v1632_v37, %v711_v16  ;;  %v1274_v25 = vpack.c.bf16 %v752_v17, %v752_v17  ;;  %v1306_v26 = vpack.c.bf16 %v784_v18, %v784_v18  ;;  %v480_v27 = vpop.f32.mrf.mxu0  ;;  %v608_v28 = vpop.f32.mrf.mxu1 }
  0xfd   :  { %v1272_v29 = vpack.c.bf16 %v750_v21, %v750_v21  ;;  %v753_v31 = vadd.f32 %v1632_v37, %v682_v23  ;;  %v785_v32 = vadd.f32 %v1632_v37, %v714_v24  ;;  %v680_v33 = vmul.f32 %v1627_v35, %v480_v27 }
  0xfe   :  { %v1304_v30 = vpack.c.bf16 %v782_v22, %v782_v22  ;;  %1073 = vst.msk [vmem:[%s2022_s4 + $0x58] sm:$0xf] %vm1050_vm1, %v1274_v25  ;;  %1105 = vst.msk [vmem:[%s2022_s4 + $0xd8] sm:$0xf] %vm1050_vm1, %v1306_v26  ;;  %v712_v34 = vmul.f32 %v1627_v35, %v608_v28  ;;  %v1383_v36 = vpop.f32.mrf.mxu0  ;;  %v1415_v38 = vpop.f32.mrf.mxu1 }
  0xff   :  { %1071 = vst.msk [vmem:[%s2022_s4 + $0x50] sm:$0xf] %vm1050_vm1, %v1272_v29  ;;  %v1275_v39 = vpack.c.bf16 %v753_v31, %v753_v31  ;;  %v1307_v40 = vpack.c.bf16 %v785_v32, %v785_v32  ;;  %v685_v41 = vmul.f32 %v1383_v36, %v1627_v35  ;;  %v717_v42 = vmul.f32 %v1415_v38, %v1627_v35 }
 0x100   :  { %1103 = vst.msk [vmem:[%s2022_s4 + $0xd0] sm:$0xf] %vm1050_vm1, %v1304_v30  ;;  %v751_v43 = vadd.f32 %v1632_v37, %v680_v33  ;;  %v783_v44 = vadd.f32 %v1632_v37, %v712_v34  ;;  %v493_v45 = vpop.f32.mrf.mxu0  ;;  %v621_v46 = vpop.f32.mrf.mxu1 }
 0x101   :  { %1074 = vst.msk [vmem:[%s2022_s4 + $0x5c] sm:$0xf] %vm1050_vm1, %v1275_v39  ;;  %1106 = vst.msk [vmem:[%s2022_s4 + $0xdc] sm:$0xf] %vm1050_vm1, %v1307_v40  ;;  %v756_v47 = vadd.f32 %v1632_v37, %v685_v41  ;;  %v788_v48 = vadd.f32 %v1632_v37, %v717_v42  ;;  %v683_v49 = vmul.f32 %v1627_v35, %v493_v45 }
 0x102   :  { %v715_v50 = vmul.f32 %v1627_v35, %v621_v46  ;;  %v1273_v51 = vpack.c.bf16 %v751_v43, %v751_v43  ;;  %v1305_v52 = vpack.c.bf16 %v783_v44, %v783_v44  ;;  %v1384_v53 = vpop.f32.mrf.mxu0  ;;  %v1416_v54 = vpop.f32.mrf.mxu1 }
 0x103   :  { %v1278_v55 = vpack.c.bf16 %v756_v47, %v756_v47  ;;  %v1310_v56 = vpack.c.bf16 %v788_v48, %v788_v48  ;;  %v754_v57 = vadd.f32 %v1632_v37, %v683_v49  ;;  %v686_v59 = vmul.f32 %v1384_v53, %v1627_v35 }
 0x104   :  { %v786_v58 = vadd.f32 %v1632_v37, %v715_v50  ;;  %1072 = vst.msk [vmem:[%s2022_s4 + $0x54] sm:$0xf] %vm1050_vm1, %v1273_v51  ;;  %1104 = vst.msk [vmem:[%s2022_s4 + $0xd4] sm:$0xf] %vm1050_vm1, %v1305_v52  ;;  %v718_v60 = vmul.f32 %v1416_v54, %v1627_v35  ;;  %v496_v61 = vpop.f32.mrf.mxu0  ;;  %v624_v62 = vpop.f32.mrf.mxu1 }
 0x105   :  { %1077 = vst.msk [vmem:[%s2022_s4 + $0x68] sm:$0xf] %vm1050_vm1, %v1278_v55  ;;  %1109 = vst.msk [vmem:[%s2022_s4 + $0xe8] sm:$0xf] %vm1050_vm1, %v1310_v56  ;;  %v1276_v63 = vpack.c.bf16 %v754_v57, %v754_v57  ;;  %v684_v1 = vmul.f32 %v1627_v35, %v496_v61  ;;  %v716_v2 = vmul.f32 %v1627_v35, %v624_v62 }
 0x106   :  { %v1308_v0 = vpack.c.bf16 %v786_v58, %v786_v58  ;;  %v757_v3 = vadd.f32 %v1632_v37, %v686_v59  ;;  %v789_v4 = vadd.f32 %v1632_v37, %v718_v60  ;;  %v1387_v5 = vpop.f32.mrf.mxu0  ;;  %v1419_v6 = vpop.f32.mrf.mxu1 }
 0x107   :  { %1075 = vst.msk [vmem:[%s2022_s4 + $0x60] sm:$0xf] %vm1050_vm1, %v1276_v63  ;;  %v755_v7 = vadd.f32 %v1632_v37, %v684_v1  ;;  %v787_v8 = vadd.f32 %v1632_v37, %v716_v2  ;;  %v689_v9 = vmul.f32 %v1387_v5, %v1627_v35  ;;  %v721_v10 = vmul.f32 %v1419_v6, %v1627_v35 }
 0x108   :  { %1107 = vst.msk [vmem:[%s2022_s4 + $0xe0] sm:$0xf] %vm1050_vm1, %v1308_v0  ;;  %v1279_v11 = vpack.c.bf16 %v757_v3, %v757_v3  ;;  %v1311_v12 = vpack.c.bf16 %v789_v4, %v789_v4  ;;  %v509_v13 = vpop.f32.mrf.mxu0  ;;  %v637_v14 = vpop.f32.mrf.mxu1 }
 0x109   :  { %v1277_v15 = vpack.c.bf16 %v755_v7, %v755_v7  ;;  %v1309_v16 = vpack.c.bf16 %v787_v8, %v787_v8  ;;  %v760_v17 = vadd.f32 %v1632_v37, %v689_v9  ;;  %v792_v18 = vadd.f32 %v1632_v37, %v721_v10 }
 0x10a   :  { %1078 = vst.msk [vmem:[%s2022_s4 + $0x6c] sm:$0xf] %vm1050_vm1, %v1279_v11  ;;  %1110 = vst.msk [vmem:[%s2022_s4 + $0xec] sm:$0xf] %vm1050_vm1, %v1311_v12  ;;  %v687_v19 = vmul.f32 %v1627_v35, %v509_v13  ;;  %v719_v20 = vmul.f32 %v1627_v35, %v637_v14  ;;  %v1388_v21 = vpop.f32.mrf.mxu0  ;;  %v1420_v22 = vpop.f32.mrf.mxu1 }
 0x10b   :  { %1076 = vst.msk [vmem:[%s2022_s4 + $0x64] sm:$0xf] %vm1050_vm1, %v1277_v15  ;;  %1108 = vst.msk [vmem:[%s2022_s4 + $0xe4] sm:$0xf] %vm1050_vm1, %v1309_v16  ;;  %v1282_v23 = vpack.c.bf16 %v760_v17, %v760_v17  ;;  %v1314_v24 = vpack.c.bf16 %v792_v18, %v792_v18  ;;  %v690_v25 = vmul.f32 %v1388_v21, %v1627_v35 }
 0x10c   :  { %v722_v26 = vmul.f32 %v1420_v22, %v1627_v35  ;;  %v758_v27 = vadd.f32 %v1632_v37, %v687_v19  ;;  %v790_v28 = vadd.f32 %v1632_v37, %v719_v20  ;;  %v512_v29 = vpop.f32.mrf.mxu0  ;;  %v640_v30 = vpop.f32.mrf.mxu1 }
 0x10d   :  { %1081 = vst.msk [vmem:[%s2022_s4 + $0x78] sm:$0xf] %vm1050_vm1, %v1282_v23  ;;  %1113 = vst.msk [vmem:[%s2022_s4 + $0xf8] sm:$0xf] %vm1050_vm1, %v1314_v24  ;;  %v761_v31 = vadd.f32 %v1632_v37, %v690_v25  ;;  %v688_v33 = vmul.f32 %v1627_v35, %v512_v29  ;;  %v720_v34 = vmul.f32 %v1627_v35, %v640_v30 }
 0x10e   :  { %v793_v32 = vadd.f32 %v1632_v37, %v722_v26  ;;  %v1280_v36 = vpack.c.bf16 %v758_v27, %v758_v27  ;;  %v1312_v38 = vpack.c.bf16 %v790_v28, %v790_v28 }
 0x10f   :  { %v1283_v39 = vpack.c.bf16 %v761_v31, %v761_v31  ;;  %v759_v41 = vadd.f32 %v1632_v37, %v688_v33  ;;  %v791_v42 = vadd.f32 %v1632_v37, %v720_v34 }
 0x110   :  { %v1315_v40 = vpack.c.bf16 %v793_v32, %v793_v32  ;;  %1079 = vst.msk [vmem:[%s2022_s4 + $0x70] sm:$0xf] %vm1050_vm1, %v1280_v36  ;;  %1111 = vst.msk [vmem:[%s2022_s4 + $0xf0] sm:$0xf] %vm1050_vm1, %v1312_v38 }
 0x111   :  { %1082 = vst.msk [vmem:[%s2022_s4 + $0x7c] sm:$0xf] %vm1050_vm1, %v1283_v39  ;;  %v1281_v35 = vpack.c.bf16 %v759_v41, %v759_v41  ;;  %v1313_v37 = vpack.c.bf16 %v791_v42, %v791_v42 }
 0x112   :  { %1114 = vst.msk [vmem:[%s2022_s4 + $0xfc] sm:$0xf] %vm1050_vm1, %v1315_v40 }
 0x113   :  { %1080 = vst.msk [vmem:[%s2022_s4 + $0x74] sm:$0xf] %vm1050_vm1, %v1281_v35  ;;  %1112 = vst.msk [vmem:[%s2022_s4 + $0xf4] sm:$0xf] %vm1050_vm1, %v1313_v37 }

</bundles_post_ra>
